<compile_context>
chip_gen: v5e
topology: v5e:2x2
jax: 0.10.0
libtpu: 0.0.40
codegen_flags: <defaults>
</compile_context>

<pallas_src>
import functools

import jax
import jax.numpy as jnp
from jax.experimental import pallas as pl
from jax.experimental.pallas import tpu as pltpu


def _ce_kernel(x_ref, xt_ref, *refs, logit_scale, label_smoothing,
               lse_square_scale, vocab_size, last_chunk_valid, want_z,
               is_ragged):
    """Online-logsumexp sweep over one (bb, tv) logits chunk."""
    if want_z:
        loss_ref, zloss_ref = refs[0], refs[1]
        m_ref, l_ref, sx_ref = refs[2:]
    else:
        loss_ref, zloss_ref = refs[0], None
        m_ref, l_ref, sx_ref = refs[1:]

    j = pl.program_id(1)
    nj = pl.num_programs(1)

    @pl.when(j == 0)
    def _init():
        m_ref[...] = jnp.full(m_ref.shape, -jnp.inf, dtype=m_ref.dtype)
        l_ref[...] = jnp.zeros_like(l_ref)
        if label_smoothing > 0.0:
            sx_ref[...] = jnp.zeros_like(sx_ref)

    # Single HBM read of the chunk; cast/scale on-chip (pass bf16 logits to
    # halve HBM traffic -- the cast to f32 here is free on the VPU).
    x = x_ref[...].astype(jnp.float32)                          # (bb, tv)
    if logit_scale != 1.0:
        x = x * logit_scale

    def _update(x_lse, x_sum):
        # Online logsumexp: ~1 VALU op/element (the subtract); exp goes to the
        # EUP slot and max/sum reductions to the XLU slot (both have slack).
        m_prev = m_ref[...]
        m_new = jnp.maximum(m_prev, jnp.max(x_lse, axis=-1, keepdims=True))
        alpha = jnp.exp(m_prev - m_new)
        p = jnp.exp(x_lse - m_new)
        l_ref[...] = alpha * l_ref[...] + jnp.sum(p, axis=-1, keepdims=True)
        m_ref[...] = m_new
        if label_smoothing > 0.0:
            sx_ref[...] += jnp.sum(x_sum, axis=-1, keepdims=True)

    if is_ragged:
        # Interior chunks are always full: zero masking work on them.
        @pl.when(j < nj - 1)
        def _interior():
            _update(x, x)

        # Only the last chunk is ragged: mask padded lanes with a chunk-local
        # iota compared against a STATIC valid-lane count.
        @pl.when(j == nj - 1)
        def _last():
            lane = jax.lax.broadcasted_iota(jnp.int32, x.shape, 1)
            ok = lane < last_chunk_valid
            x_lse = jnp.where(ok, x, -jnp.inf)
            x_sum = jnp.where(ok, x, 0.0) if label_smoothing > 0.0 else x
            _update(x_lse, x_sum)
    else:
        _update(x, x)

    @pl.when(j == nj - 1)
    def _finalize():
        lse = m_ref[...] + jnp.log(l_ref[...])                  # (bb, 1)
        x_t = xt_ref[...]                                       # pre-gathered
        if logit_scale != 1.0:
            x_t = x_t * logit_scale
        if label_smoothing > 0.0:
            smoothed = (1.0 - label_smoothing) * x_t + \
                label_smoothing * sx_ref[...] / float(vocab_size)
        else:
            smoothed = x_t
        if lse_square_scale != 0.0:
            z = lse_square_scale * lse * lse
            loss_ref[...] = lse - smoothed + z
            if zloss_ref is not None:
                zloss_ref[...] = z
        else:
            loss_ref[...] = lse - smoothed
            if zloss_ref is not None:
                zloss_ref[...] = jnp.zeros_like(lse)


def _generation_defaults():
    """(block_rows, block_vocab, vmem_limit_bytes) sized per TPU generation."""
    try:
        vmem = getattr(pltpu.get_tpu_info(), "vmem_capacity_bytes", None)
    except Exception:
        vmem = None
    if vmem is not None and vmem >= 100 * 1024 * 1024:
        # v5e / v6e (128 MiB VMEM): bigger vocab tiles -> fewer grid steps.
        return 256, 4096, 64 * 1024 * 1024
    # v7x (64 MiB VMEM) or unknown: modest tiles, leave double-buffer headroom.
    return 256, 2048, 40 * 1024 * 1024


def _pick_vocab_tile(V, block_vocab):
    """Pick a lane tile; prefer an exact divisor of V so no masking is needed."""
    if V <= block_vocab:
        return V                                   # single full chunk, any V
    top = max(128, (block_vocab // 128) * 128)
    for tv in range(top, 127, -128):               # multiples of 128 only
        if V % tv == 0:
            return tv                              # exact divisor: mask-free
    return top                                     # fall back: ragged last chunk


def _pick_batch_tile(B, block_rows):
    if B > block_rows:
        return max(8, (block_rows // 8) * 8)
    # Guarantee >= 2 "parallel" tiles when we can so megacore (v7x: 2 TCs)
    # shards the batch axis; negligible cost on single-TC v5e/v6e.
    half = ((-(-B // 2)) + 7) // 8 * 8             # ceil(B/2) rounded up to 8
    return half if 0 < half < B else B


def cross_entropy_loss_pallas(logits, target, *, label_smoothing=0.0,
                              logit_scale=1.0, lse_square_scale=0.0,
                              ignore_index=-100, return_z_loss=True,
                              block_rows=None, block_vocab=None,
                              vmem_limit_bytes=None):
    """Per-row cross-entropy loss (and optional z-loss) via a Pallas TPU kernel.

    logits: (B, V) float -- prefer bf16 (halves HBM traffic; cast happens
    on-chip).  target: (B,) int.  Returns loss (B,) f32, or (loss, z_loss).
    """
    B, V = logits.shape
    def_rows, def_vocab, def_vmem = _generation_defaults()
    block_rows = def_rows if block_rows is None else block_rows
    block_vocab = def_vocab if block_vocab is None else block_vocab
    vmem_limit_bytes = def_vmem if vmem_limit_bytes is None else vmem_limit_bytes

    tv = _pick_vocab_tile(V, block_vocab)
    bb = _pick_batch_tile(B, block_rows)
    nb = pl.cdiv(B, bb)
    nv = pl.cdiv(V, tv)
    is_ragged = (V % tv) != 0
    last_chunk_valid = V - (nv - 1) * tv

    tgt = target.astype(jnp.int32)
    # Target-logit gather hoisted out of the kernel: O(B) bytes vs the B*V sweep.
    safe_tgt = jnp.clip(tgt, 0, V - 1)
    x_t = jnp.take_along_axis(logits, safe_tgt[:, None], axis=-1)
    x_t = x_t.astype(jnp.float32)                               # (B, 1)

    kernel = functools.partial(
        _ce_kernel,
        logit_scale=float(logit_scale),
        label_smoothing=float(label_smoothing),
        lse_square_scale=float(lse_square_scale),
        vocab_size=V,
        last_chunk_valid=int(last_chunk_valid),
        want_z=bool(return_z_loss),
        is_ragged=bool(is_ragged),
    )

    row_shape = jax.ShapeDtypeStruct((B, 1), jnp.float32)

    def row_spec():
        return pl.BlockSpec((bb, 1), lambda i, j: (i, 0))

    if return_z_loss:
        out_shape = (row_shape, row_shape)
        out_specs = (row_spec(), row_spec())
    else:
        out_shape = row_shape
        out_specs = row_spec()

    outs = pl.pallas_call(
        kernel,
        out_shape=out_shape,
        grid=(nb, nv),
        in_specs=[pl.BlockSpec((bb, tv), lambda i, j: (i, j)),
                  pl.BlockSpec((bb, 1), lambda i, j: (i, 0))],
        out_specs=out_specs,
        scratch_shapes=[pltpu.VMEM((bb, 1), jnp.float32) for _ in range(3)],
        compiler_params=pltpu.CompilerParams(
            dimension_semantics=("parallel", "arbitrary"),
            vmem_limit_bytes=int(vmem_limit_bytes)),
    )(logits, x_t)

    # ignore_index masking is O(B): do it in the wrapper, not the sweep.
    valid = (tgt != int(ignore_index))[:, None]
    if return_z_loss:
        loss2d, zloss2d = outs
        return (jnp.where(valid, loss2d, 0.0)[:, 0],
                jnp.where(valid, zloss2d, 0.0)[:, 0])
    return jnp.where(valid, outs, 0.0)[:, 0]


class CrossEntropyLoss:
    """JAX/Pallas port of flash_attn.losses.cross_entropy.CrossEntropyLoss (forward only)."""

    def __init__(self, ignore_index=False, reduction='mean', label_smoothing=0.0,
                 logit_scale=1.0, lse_square_scale=0.0, inplace_backward=False,
                 process_group=None, return_z_loss=False):
        if reduction not in ['mean', 'none', 'sum']:
            raise NotImplementedError(
                "only support reduction= 'mean' or 'none' or 'sum' ")
        # NB: the original default ignore_index=False coerces to 0, so target
        # class 0 would be ignored under default construction (kept to match
        # the spec; pass an explicit ignore_index such as -100 in practice).
        self.ignore_index = int(ignore_index)
        self.reduction = reduction
        self.label_smoothing = label_smoothing
        self.logit_scale = logit_scale
        self.lse_square_scale = lse_square_scale
        self.inplace_backward = inplace_backward   # forward-only port; no effect
        self.process_group = process_group         # TODO(synk): tensor-parallel vocab split not implemented
        self.return_z_loss = return_z_loss

    def __call__(self, input, target):
        res = cross_entropy_loss_pallas(
            input, target,
            label_smoothing=self.label_smoothing,
            logit_scale=self.logit_scale,
            lse_square_scale=self.lse_square_scale,
            ignore_index=self.ignore_index,
            return_z_loss=self.return_z_loss,
        )
        if self.return_z_loss:
            loss, z_loss = res
        else:
            loss, z_loss = res, None

        if self.reduction == 'mean':
            # NB: if every target equals ignore_index this divides by 0 -> NaN
            # (matches the PyTorch reference behaviour).
            denom = jnp.sum(target != self.ignore_index).astype(jnp.float32)
            loss = jnp.sum(loss) / denom
        elif self.reduction == 'sum':
            loss = jnp.sum(loss)
        if not self.return_z_loss:
            return loss
        if self.reduction == 'mean':
            denom = jnp.sum(target != self.ignore_index).astype(jnp.float32)
            z_loss = jnp.sum(z_loss) / denom
        elif self.reduction == 'sum':
            z_loss = jnp.sum(z_loss)
        return loss, z_loss


def _reference(logits, target, *, label_smoothing, logit_scale, lse_square_scale,
               ignore_index):
    x = logits.astype(jnp.float32) * logit_scale
    lse = jax.nn.logsumexp(x, axis=-1)
    x_t = jnp.take_along_axis(x, jnp.clip(target, 0, x.shape[-1] - 1)[:, None],
                              axis=-1)[:, 0]
    V = x.shape[-1]
    smoothed = (1.0 - label_smoothing) * x_t + label_smoothing * jnp.sum(x, -1) / V
    z = lse_square_scale * lse * lse
    loss = lse - smoothed + z
    valid = target != ignore_index
    return jnp.where(valid, loss, 0.0), jnp.where(valid, z, 0.0)


if __name__ == "__main__":
    key = jax.random.PRNGKey(0)
    k1, k2, k3, k4, k5, k6 = jax.random.split(key, 6)

    # ---- Test 1: chunked path (2 batch tiles x 4 mask-free vocab chunks),
    #      smoothing + z-loss + logit scaling + ignore_index.
    B, V = 16, 512
    logits = jax.random.normal(k1, (B, V), dtype=jnp.float32)
    target = jax.random.randint(k2, (B,), 0, V, dtype=jnp.int32)
    target = target.at[3].set(-100)   # exercise ignore_index

    loss_rows, z_rows = cross_entropy_loss_pallas(
        logits, target, label_smoothing=0.1, logit_scale=1.25,
        lse_square_scale=1e-4, ignore_index=-100, return_z_loss=True,
        block_rows=8, block_vocab=128)
    jax.block_until_ready((loss_rows, z_rows))
    ref_loss, ref_z = _reference(logits, target, label_smoothing=0.1,
                                 logit_scale=1.25, lse_square_scale=1e-4,
                                 ignore_index=-100)
    assert jnp.allclose(loss_rows, ref_loss, atol=1e-4, rtol=1e-4)
    assert jnp.allclose(z_rows, ref_z, atol=1e-4, rtol=1e-4)

    # ---- Test 2: ragged last vocab chunk (V=320, chunk=256 -> 64 valid lanes),
    #      smoothing on, loss-only output (masked path runs on last chunk only).
    V2 = 320
    logits2 = jax.random.normal(k3, (B, V2), dtype=jnp.float32)
    target2 = jax.random.randint(k4, (B,), 0, V2, dtype=jnp.int32)
    loss2 = cross_entropy_loss_pallas(
        logits2, target2, label_smoothing=0.1, logit_scale=1.0,
        lse_square_scale=0.0, ignore_index=-100, return_z_loss=False,
        block_rows=8, block_vocab=256)
    jax.block_until_ready(loss2)
    ref_loss2, _ = _reference(logits2, target2, label_smoothing=0.1,
                              logit_scale=1.0, lse_square_scale=0.0,
                              ignore_index=-100)
    assert jnp.allclose(loss2, ref_loss2, atol=1e-4, rtol=1e-4)

    # ---- Test 3: module-level API, mean reduction, generation-default tiling.
    ce = CrossEntropyLoss(ignore_index=-100, reduction='mean',
                          label_smoothing=0.1, logit_scale=1.25,
                          lse_square_scale=1e-4, return_z_loss=True)
    loss_mean, z_mean = ce(logits, target)
    jax.block_until_ready((loss_mean, z_mean))
    denom = jnp.sum(target != -100).astype(jnp.float32)
    assert jnp.allclose(loss_mean, jnp.sum(ref_loss) / denom, atol=1e-4, rtol=1e-4)
    assert jnp.allclose(z_mean, jnp.sum(ref_z) / denom, atol=1e-4, rtol=1e-4)

    # ---- Test 4: bf16 logits (recommended feeding dtype), 2 batch tiles.
    B3, V3 = 32, 512
    logits3 = jax.random.normal(k5, (B3, V3), dtype=jnp.float32).astype(jnp.bfloat16)
    target3 = jax.random.randint(k6, (B3,), 0, V3, dtype=jnp.int32)
    loss3 = cross_entropy_loss_pallas(
        logits3, target3, label_smoothing=0.0, logit_scale=1.0,
        lse_square_scale=0.0, ignore_index=-100, return_z_loss=False,
        block_rows=32, block_vocab=512)
    jax.block_until_ready(loss3)
    ref_loss3, _ = _reference(logits3, target3, label_smoothing=0.0,
                              logit_scale=1.0, lse_square_scale=0.0,
                              ignore_index=-100)
    assert jnp.allclose(loss3, ref_loss3, atol=2e-3, rtol=2e-3)

    print("KERNEL_OK")
</pallas_src>

<mosaic_0001>
module attributes {stable_mosaic.version = 11 : i64} {
  func.func @_ce_kernel(%arg0: i32, %arg1: i32, %arg2: memref<8x128xf32, #tpu.memory_space<vmem>>, %arg3: memref<8x1xf32, #tpu.memory_space<vmem>>, %arg4: memref<8x1xf32, #tpu.memory_space<vmem>>, %arg5: memref<8x1xf32, #tpu.memory_space<vmem>>, %arg6: memref<8x1xf32, #tpu.memory_space<vmem>>, %arg7: memref<8x1xf32, #tpu.memory_space<vmem>>, %arg8: memref<8x1xf32, #tpu.memory_space<vmem>>) attributes {dimension_semantics = [#tpu.dimension_semantics<parallel>, #tpu.dimension_semantics<arbitrary>], iteration_bounds = array<i64: 2, 4>, scalar_prefetch = 0 : i64, scratch_operands = 3 : i64, tpu.core_type = #tpu.core_type<tc>, window_params = [{transform_indices = @transform_0, window_bounds = array<i64: 8, 128>}, {transform_indices = @transform_1, window_bounds = array<i64: 8, 1>}, {transform_indices = @transform_2, window_bounds = array<i64: 8, 1>}, {transform_indices = @transform_3, window_bounds = array<i64: 8, 1>}]} {
    %c0_i32 = arith.constant 0 : i32
    %0 = arith.cmpi eq, %arg1, %c0_i32 : i32
    %1 = arith.extui %0 : i1 to i32
    %c0_i32_0 = arith.constant 0 : i32
    %2 = arith.cmpi ne, %1, %c0_i32_0 : i32
    scf.if %2 {
      %cst_18 = arith.constant 0xFF800000 : f32
      %30 = vector.broadcast %cst_18 : f32 to vector<8x1xf32>
      %c0_19 = arith.constant 0 : index
      %c0_20 = arith.constant 0 : index
      %31 = vector.load %arg6[%c0_19, %c0_20] : memref<8x1xf32, #tpu.memory_space<vmem>>, vector<8x1xf32>
      tpu.vector_store %arg6[%c0_19, %c0_20], %30 {strides = array<i32>} : memref<8x1xf32, #tpu.memory_space<vmem>>, vector<8x1xf32>,
      %cst_21 = arith.constant 0.000000e+00 : f32
      %32 = vector.broadcast %cst_21 : f32 to vector<8x1xf32>
      %c0_22 = arith.constant 0 : index
      %c0_23 = arith.constant 0 : index
      %33 = vector.load %arg7[%c0_22, %c0_23] : memref<8x1xf32, #tpu.memory_space<vmem>>, vector<8x1xf32>
      tpu.vector_store %arg7[%c0_22, %c0_23], %32 {strides = array<i32>} : memref<8x1xf32, #tpu.memory_space<vmem>>, vector<8x1xf32>,
      %cst_24 = arith.constant 0.000000e+00 : f32
      %34 = vector.broadcast %cst_24 : f32 to vector<8x1xf32>
      %c0_25 = arith.constant 0 : index
      %c0_26 = arith.constant 0 : index
      %35 = vector.load %arg8[%c0_25, %c0_26] : memref<8x1xf32, #tpu.memory_space<vmem>>, vector<8x1xf32>
      tpu.vector_store %arg8[%c0_25, %c0_26], %34 {strides = array<i32>} : memref<8x1xf32, #tpu.memory_space<vmem>>, vector<8x1xf32>,
    } else {
    }
    %c0 = arith.constant 0 : index
    %c0_1 = arith.constant 0 : index
    %3 = vector.load %arg2[%c0, %c0_1] : memref<8x128xf32, #tpu.memory_space<vmem>>, vector<8x128xf32>
    %cst = arith.constant 1.250000e+00 : f32
    %4 = vector.broadcast %cst : f32 to vector<8x128xf32>
    %5 = arith.mulf %3, %4 : vector<8x128xf32>
    %c0_2 = arith.constant 0 : index
    %c0_3 = arith.constant 0 : index
    %6 = vector.load %arg6[%c0_2, %c0_3] : memref<8x1xf32, #tpu.memory_space<vmem>>, vector<8x1xf32>
    %cst_4 = arith.constant dense<0xFF800000> : vector<8xf32>
    %7 = vector.multi_reduction <maximumf>, %5, %cst_4 [1] : vector<8x128xf32> to vector<8xf32>
    %8 = vector.shape_cast %7 : vector<8xf32> to vector<8x1xf32>
    %9 = arith.maximumf %6, %8 : vector<8x1xf32>
    %10 = arith.subf %6, %9 : vector<8x1xf32>
    %11 = math.exp %10 : vector<8x1xf32>
    %12 = vector.broadcast %9 : vector<8x1xf32> to vector<8x128xf32>
    %13 = arith.subf %5, %12 : vector<8x128xf32>
    %14 = math.exp %13 : vector<8x128xf32>
    %c0_5 = arith.constant 0 : index
    %c0_6 = arith.constant 0 : index
    %15 = vector.load %arg7[%c0_5, %c0_6] : memref<8x1xf32, #tpu.memory_space<vmem>>, vector<8x1xf32>
    %16 = arith.mulf %11, %15 : vector<8x1xf32>
    %cst_7 = arith.constant dense<0.000000e+00> : vector<8xf32>
    %17 = vector.multi_reduction <add>, %14, %cst_7 [1] : vector<8x128xf32> to vector<8xf32>
    %18 = vector.shape_cast %17 : vector<8xf32> to vector<8x1xf32>
    %19 = arith.addf %16, %18 : vector<8x1xf32>
    %c0_8 = arith.constant 0 : index
    %c0_9 = arith.constant 0 : index
    %20 = vector.load %arg7[%c0_8, %c0_9] : memref<8x1xf32, #tpu.memory_space<vmem>>, vector<8x1xf32>
    tpu.vector_store %arg7[%c0_8, %c0_9], %19 {strides = array<i32>} : memref<8x1xf32, #tpu.memory_space<vmem>>, vector<8x1xf32>,
    %c0_10 = arith.constant 0 : index
    %c0_11 = arith.constant 0 : index
    %21 = vector.load %arg6[%c0_10, %c0_11] : memref<8x1xf32, #tpu.memory_space<vmem>>, vector<8x1xf32>
    tpu.vector_store %arg6[%c0_10, %c0_11], %9 {strides = array<i32>} : memref<8x1xf32, #tpu.memory_space<vmem>>, vector<8x1xf32>,
    %c0_12 = arith.constant 0 : index
    %c0_13 = arith.constant 0 : index
    %22 = vector.load %arg8[%c0_12, %c0_13] : memref<8x1xf32, #tpu.memory_space<vmem>>, vector<8x1xf32>
    %cst_14 = arith.constant dense<0.000000e+00> : vector<8xf32>
    %23 = vector.multi_reduction <add>, %5, %cst_14 [1] : vector<8x128xf32> to vector<8xf32>
    %24 = vector.shape_cast %23 : vector<8xf32> to vector<8x1xf32>
    %25 = arith.addf %22, %24 : vector<8x1xf32>
    %c0_15 = arith.constant 0 : index
    %c0_16 = arith.constant 0 : index
    %26 = vector.load %arg8[%c0_15, %c0_16] : memref<8x1xf32, #tpu.memory_space<vmem>>, vector<8x1xf32>
    tpu.vector_store %arg8[%c0_15, %c0_16], %25 {strides = array<i32>} : memref<8x1xf32, #tpu.memory_space<vmem>>, vector<8x1xf32>,
    %c3_i32 = arith.constant 3 : i32
    %27 = arith.cmpi eq, %arg1, %c3_i32 : i32
    %28 = arith.extui %27 : i1 to i32
    %c0_i32_17 = arith.constant 0 : i32
    %29 = arith.cmpi ne, %28, %c0_i32_17 : i32
    scf.if %29 {
      %c0_18 = arith.constant 0 : index
      %c0_19 = arith.constant 0 : index
      %30 = vector.load %arg6[%c0_18, %c0_19] : memref<8x1xf32, #tpu.memory_space<vmem>>, vector<8x1xf32>
      %c0_20 = arith.constant 0 : index
      %c0_21 = arith.constant 0 : index
      %31 = vector.load %arg7[%c0_20, %c0_21] : memref<8x1xf32, #tpu.memory_space<vmem>>, vector<8x1xf32>
      %32 = math.log %31 : vector<8x1xf32>
      %33 = arith.addf %30, %32 : vector<8x1xf32>
      %c0_22 = arith.constant 0 : index
      %c0_23 = arith.constant 0 : index
      %34 = vector.load %arg3[%c0_22, %c0_23] : memref<8x1xf32, #tpu.memory_space<vmem>>, vector<8x1xf32>
      %cst_24 = arith.constant 1.250000e+00 : f32
      %35 = vector.broadcast %cst_24 : f32 to vector<8x1xf32>
      %36 = arith.mulf %34, %35 : vector<8x1xf32>
      %cst_25 = arith.constant 0.899999976 : f32
      %37 = vector.broadcast %cst_25 : f32 to vector<8x1xf32>
      %38 = arith.mulf %37, %36 : vector<8x1xf32>
      %c0_26 = arith.constant 0 : index
      %c0_27 = arith.constant 0 : index
      %39 = vector.load %arg8[%c0_26, %c0_27] : memref<8x1xf32, #tpu.memory_space<vmem>>, vector<8x1xf32>
      %cst_28 = arith.constant 1.000000e-01 : f32
      %40 = vector.broadcast %cst_28 : f32 to vector<8x1xf32>
      %41 = arith.mulf %40, %39 : vector<8x1xf32>
      %cst_29 = arith.constant 5.120000e+02 : f32
      %42 = vector.broadcast %cst_29 : f32 to vector<8x1xf32>
      %43 = arith.divf %41, %42 : vector<8x1xf32>
      %44 = arith.addf %38, %43 : vector<8x1xf32>
      %cst_30 = arith.constant 9.99999974E-5 : f32
      %45 = vector.broadcast %cst_30 : f32 to vector<8x1xf32>
      %46 = arith.mulf %45, %33 : vector<8x1xf32>
      %47 = arith.mulf %46, %33 : vector<8x1xf32>
      %48 = arith.subf %33, %44 : vector<8x1xf32>
      %49 = arith.addf %48, %47 : vector<8x1xf32>
      %c0_31 = arith.constant 0 : index
      %c0_32 = arith.constant 0 : index
      %50 = vector.load %arg4[%c0_31, %c0_32] : memref<8x1xf32, #tpu.memory_space<vmem>>, vector<8x1xf32>
      tpu.vector_store %arg4[%c0_31, %c0_32], %49 {strides = array<i32>} : memref<8x1xf32, #tpu.memory_space<vmem>>, vector<8x1xf32>,
      %c0_33 = arith.constant 0 : index
      %c0_34 = arith.constant 0 : index
      %51 = vector.load %arg5[%c0_33, %c0_34] : memref<8x1xf32, #tpu.memory_space<vmem>>, vector<8x1xf32>
      tpu.vector_store %arg5[%c0_33, %c0_34], %47 {strides = array<i32>} : memref<8x1xf32, #tpu.memory_space<vmem>>, vector<8x1xf32>,
    } else {
    }
    return
  }
  func.func @transform_0(%arg0: i32, %arg1: i32) -> (i32, i32) {
    %c0_i32 = arith.constant 0 : i32
    return %arg0, %arg1 : i32, i32
  }
  func.func @transform_1(%arg0: i32, %arg1: i32) -> (i32, i32) {
    %c0_i32 = arith.constant 0 : i32
    %c0_i32_0 = arith.constant 0 : i32
    return %arg0, %c0_i32 : i32, i32
  }
  func.func @transform_2(%arg0: i32, %arg1: i32) -> (i32, i32) {
    %c0_i32 = arith.constant 0 : i32
    %c0_i32_0 = arith.constant 0 : i32
    return %arg0, %c0_i32 : i32, i32
  }
  func.func @transform_3(%arg0: i32, %arg1: i32) -> (i32, i32) {
    %c0_i32 = arith.constant 0 : i32
    %c0_i32_0 = arith.constant 0 : i32
    return %arg0, %c0_i32 : i32, i32
  }
}

</mosaic_0001>

<bundles_post_ra>
// kernel: tpu_custom_call.1
= control target key start
LH: loop header
LB: loop body
LE: loop exit
PB: predicated region body
PF: predicated region fallthrough
CT: control target
= control target key end

     0   :  { %9 = vsyncpa [#allocation6], 0  ;;  %s788_s0 = inlined_call_operand.hbm [shape: f32[16,512], index: 0, kind: input, shape index: {}]   ;;  %s789_s1 = inlined_call_operand.vmem [shape: f32[16,1], index: 1, kind: input, shape index: {}]   ;;  %s790_s2 = inlined_call_operand.vmem [shape: f32[16,1], index: 2, kind: output, shape index: {0}]   ;;  %s791_s3 = inlined_call_operand.vmem [shape: f32[16,1], index: 3, kind: output, shape index: {1}]  }
   0x1   :  { %11 = vsyncpa [#allocation6 + $0x1], 0  ;;  %s642_s12 = smov 0   ;;  %s644_s13 = smov 0  }
   0x2   :  { %s646_s14 = smov 0   ;;  %s648_s15 = smov 0  }
   0x3   :  { %s650_s16 = smov 0   ;;  %s652_s17 = smov 0  }
   0x4   :  { %s654_s18 = smov 0   ;;  %s656_s19 = smov 0  }
   0x5 LB: > { %s420_s20 = sadd.s32 4294967295, %s616_s19   ;;  %s26_s21 = sadd.s32 1, %s608_s17  ;;  %s616_s19 = sphi %s656_s19, %s17_s19   ;;  %s612_s18 = sphi %s654_s18, %s800_s18   ;;  %s608_s17 = sphi %s652_s17, %s799_s17   ;;  %s604_s16 = sphi %s650_s16, %s798_s16   ;;  %s600_s15 = sphi %s648_s15, %s797_s15   ;;  %s596_s14 = sphi %s646_s14, %s796_s14   ;;  %s592_s13 = sphi %s644_s13, %s795_s13   ;;  %s588_s12 = sphi %s642_s12, %s794_s12  }
   0x6   : > { %p27_p0 = scmp.ge.s32.totalorder %s26_s21, 4  ;;  %s29_s22 = sadd.s32 1, %s612_s18 }
   0x7   : > { %s38_s23 = sadd.s32 1, %s596_s14  ;;  %p45_p1 = scmp.ne.s32.totalorder %s596_s14, %s592_s13 }
   0x8   : > { %s802_s21 = smov (%p27_p0, %s26_s21), 0  ;;  %s804_s22 = smov (!%p27_p0, %s29_s22), %s612_s18 }
   0x9   : > { %s34_s24 = ssub.s32 %s608_s17, %s802_s21  ;;  %p46_p2 = scmp.eq.s32.totalorder %s616_s19, 0 }
   0xa   : > { %p31_p3 = scmp.ge.s32.totalorder %s804_s22, 2  ;;  %p51_p4 = scmp.ne.s32.totalorder %s592_s13, %s588_s12 }
   0xb   : > { %p693_p5 = por %p46_p2, %p45_p1  ;;  %p52_p6 = scmp.eq.s32.totalorder %s420_s20, 0 }
   0xc   : > { %s806_s22 = smov (%p31_p3, %s804_s22), 0  ;;  %p442_p8 = scmp.lt.s32.totalorder %s616_s19, 8 }
   0xd   : > { %p699_p7 = por %p52_p6, %p51_p4  ;;  %s33_s27 = ssub.s32 %s612_s18, %s806_s22 }
   0xe   : > { %s35_s28 = sor.u32 %s34_s24, %s33_s27  ;;  %s153_s29 = sand.u32 1, %s596_s14  }
   0xf   : > { %p36_p9 = scmp.eq.s32.totalorder %s35_s28, 0  ;;  %s424_s30 = sshll.u32 %s153_s29, 3 }
  0x10   : > { %s425_s4 = sshll.u32 %s612_s18, 2  ;;  %s157_s8 = scalar_lea.vmem [#allocation5], %s424_s30 }
  0x11   : > { %s709_s5 = scalar_select %p36_p9, %s596_s14, %s38_s23  }
  0x12   : > { %s161_s6 = sadd.s32 %s608_s17, %s425_s4  ;;  %s167_s9 = sshll.u32 %s157_s8, 4  ;;  %s168_s9 = int_to_ptr.vmem [resolvable:$true] %s167_s9 }
  0x13   : > { %s426_s7 = sshll.u32 %s161_s6, 3  ;;  %p439_p10 = pnand %p442_p8, %p693_p5 }
  0x14   : > { %s163_s12 = scalar_lea.hbm %s788_s0, %s426_s7  ;;  %p427_p11 = scmp.ge.s32.totalorder %s616_s19, 1 }
  0x15   : > { %s165_s20 = sshll.u32 %s163_s12, 4  ;;  %p179_p12 = scmp.lt.s32.totalorder %s616_s19, 9  ;;  %s166_s20 = int_to_ptr.hbm [resolvable:$true] %s165_s20 }
  0x16   : > { %s154_s24 = scalar_lea.sflag [#allocation6], %s153_s29 }
  0x17   : > { %441 = dma.hbm_to_vmem [thread:$0]  (!%p439_p10), %s166_s20, 128, %s168_s9, %s154_s24  }
  0x18   : > { %p180_p13 = pnand %p427_p11, %p179_p12 }
  0x19   : > { %s185_s23 = sand.u32 (!%p180_p13), 1, %s592_s13  }
  0x1a   : > { %183 = sbr.rel (%p180_p13) target bundleno = 444 (0x1bc), region = 28  ;;  %s428_s27 = sshll.u32 (!%p180_p13), %s185_s23, 3 }
  0x1b   : > { %s186_s28 = scalar_lea.sflag (!%p180_p13), [#allocation6], %s185_s23  ;;  %s189_s30 = scalar_lea.vmem (!%p180_p13), [#allocation5], %s428_s27 }
  0x1f   : > { %583 = dma.done.wait (%p699_p7), %s186_s28, 128  }
  0x20   : > { %585 = vsyncadd (%p699_p7), %s186_s28, 4294967168  ;;  %p220_p0 = scmp.lt.s32.totalorder %s604_s16, 1  ;;  %p432_p1 = scmp.ne.s32.totalorder %s600_s15, 0 }
  0x22   : > { %s808_s16 = smov (!%p220_p0, %s604_s16), 1  ;;  %235 = sbr.rel (%p432_p1) target bundleno = 43 (0x2b), region = 36 }
  0x23   : > { %s728_s25 = sshll.u32 %s808_s16, 3 }
  0x24   : > { %s223_s6 = scalar_lea.vmem %s789_s1, %s728_s25  ;;  %s227_s9 = scalar_lea.vmem %s790_s2, %s728_s25 }
  0x25   : > { %s231_s11 = scalar_lea.vmem %s791_s3, %s728_s25 }
  0x27   : > { %vm236_vm0 = vcmask 7168   ;;  %v618_v0 = vmov -inf   ;;  %v619_v1 = vmov 0.0  }
  0x28   : > { %237 = vst.msk [vmem:[#allocation2] sm:$0xff] %vm236_vm0, %v618_v0 }
  0x29   : > { %238 = vst.msk [vmem:[#allocation3] sm:$0xff] %vm236_vm0, %v619_v1 }
  0x2a   : > { %239 = vst.msk [vmem:[#allocation4] sm:$0xff] %vm236_vm0, %v619_v1 }
  0x2b PF: > { %v240_v2 = vld [vmem:[%s189_s30] sm:$0xff]  ;;  %v620_v4 = vmov 0   ;;  %vm262_vm1 = vcmask 7168   ;;  %p433_p2 = scmp.ne.s32.totalorder %s600_s15, 3 }
  0x2c   : > { %v241_v3 = vmul.f32 1.25, %v240_v2  ;;  %511 = vset.pattern.permute.xlu0 %v620_v4 }
  0x2e   : > { %243 = vmax.xlane.f32.xlu0 %v241_v3 }
  0x2f   : > { %v242_v5 = vld [vmem:[#allocation2] sm:$0xff] }
  0x30   : > { %v257_v15 = vld [vmem:[#allocation3] sm:$0xff] }
  0x31   : > { %v265_v19 = vld [vmem:[#allocation4] sm:$0xff] }
  0xa1   : > { %v244_v6 = vpop.xlane.xlu0 %243 }
  0xa2   : > { %v245_v7 = vmax.f32 %v242_v5, %v244_v6 }
  0xa4   : > { %v246_v8 = vsub.f32 %v242_v5, %v245_v7  ;;  %264 = vst.msk [vmem:[#allocation2] sm:$0xff] %vm262_vm1, %v245_v7  ;;  %251 = vperm.xlu0 %511, %v245_v7  }
  0xa6   : > { %v247_v13 = vmul.f32 1.442695, %v246_v8 }
 0x116   : > { %v252_v9 = vpop.permute.xlu0 %251 }
 0x117   : > { %v254_v10 = vsub.f32 %v241_v3, %v252_v9 }
 0x119   : > { %v255_v11 = vmul.f32 1.442695, %v254_v10 }
 0x11b   : > { %512 = vpow2.f32 %v255_v11 }
 0x11c   : > { %514 = vpow2.f32 %v247_v13 }
 0x121   : > { %v513_v12 = vpop.eup %512 }
 0x122   : > { %259 = vadd.xlane.f32.xlu1 %v513_v12  ;;  %v515_v14 = vpop.eup %514 }
 0x123   : > { %v258_v16 = vmul.f32 %v515_v14, %v257_v15 }
 0x12a   : > { %266 = vadd.xlane.f32.xlu1 %v241_v3 }
 0x195   : > { %v260_v17 = vpop.xlane.xlu1 %259 }
 0x196   : > { %v261_v18 = vadd.f32 %v260_v17, %v258_v16 }
 0x198   : > { %263 = vst.msk [vmem:[#allocation3] sm:$0xff] %vm262_vm1, %v261_v18 }
 0x19c   : > { %273 = sbr.rel (%p433_p2) target bundleno = 444 (0x1bc), region = 40 }
 0x19d   : > { %v267_v20 = vpop.xlane.xlu1 %266 }
 0x19e   : > { %v268_v21 = vadd.f32 %v267_v20, %v265_v19 }
 0x1a0   : > { %269 = vst.msk [vmem:[#allocation4] sm:$0xff] %vm262_vm1, %v268_v21 }
 0x1a1   : > { %v275_v22 = vld [vmem:[#allocation3] sm:$0xff]  ;;  %v621_v23 = vmov 512.0   ;;  %v274_v25 = vld [vmem:[#allocation2] sm:$0xff] }
 0x1a2   : > { %516 = vlog2.f32 %v275_v22  ;;  %v279_v28 = vld [vmem:[%s223_s6] sm:$0xff] }
 0x1a3   : > { %518 = vrcp.f32 %v621_v23  ;;  %v280_v33 = vmul.f32 1.25, %v279_v28 }
 0x1a5   : > { %v281_v39 = vmul.f32 0.9, %v280_v33 }
 0x1a7   : > { %v282_v31 = vld [vmem:[#allocation4] sm:$0xff] }
 0x1a8   : > { %v517_v24 = vpop.eup %516  ;;  %v283_v36 = vmul.f32 0.1, %v282_v31 }
 0x1a9   : > { %v519_v26 = vpop.eup %518  ;;  %v277_v27 = vmul.f32 0.6931472, %v517_v24 }
 0x1aa   : > { %v285_v29 = vmul.f32 512.0, %v519_v26  ;;  %vm289_vm2 = vweird.f32 %v519_v26 }
 0x1ab   : > { %v278_v30 = vadd.f32 %v277_v27, %v274_v25 }
 0x1ac   : > { %v286_v32 = vsub.f32 1.0, %v285_v29 }
 0x1ad   : > { %v293_v34 = vmul.f32 0.0001, %v278_v30 }
 0x1ae   : > { %v287_v35 = vmul.f32 %v519_v26, %v286_v32 }
 0x1af   : > { %v294_v37 = vmul.f32 %v293_v34, %v278_v30 }
 0x1b0   : > { %v288_v38 = vadd.f32 %v519_v26, %v287_v35 }
 0x1b1   : > { %298 = vst.msk [vmem:[%s231_s11] sm:$0xff] %vm262_vm1, %v294_v37 }
 0x1b2   : > { %v290_v40 = vsel %vm289_vm2, %v519_v26, %v288_v38 }
 0x1b3   : > { %v291_v41 = vmul.f32 %v290_v40, %v283_v36 }
 0x1b5   : > { %v292_v42 = vadd.f32 %v291_v41, %v281_v39 }
 0x1b7   : > { %v295_v43 = vsub.f32 %v278_v30, %v292_v42 }
 0x1b9   : > { %v296_v44 = vadd.f32 %v295_v43, %v294_v37 }
 0x1bb   : > { %297 = vst.msk [vmem:[%s227_s9] sm:$0xff] %vm262_vm1, %v296_v44 }
 0x1bc PF: > { %s17_s19 = sadd.s32 1, %s616_s19   ;;  %s794_s12 = smov %s592_s13 }
 0x1bd   : > { %p14_p3 = scmp.ge.s32.totalorder %s17_s19, 10   ;;  %s795_s13 = smov %s596_s14 }
 0x1be   : > { %s796_s14 = smov %s709_s5  ;;  %s797_s15 = smov %s608_s17 }
 0x1bf   : > { %s798_s16 = smov %s612_s18  ;;  %s799_s17 = smov %s802_s21 }
 0x1c0   : > { %s800_s18 = smov %s806_s22  ;;  %16 = sbr.rel (!%p14_p3) target bundleno = 5 (0x5), region = 91 }
 0x1c5   :  { %332 = vsyncpa [#allocation6], 1 }
 0x1c6   :  { %334 = vsyncpa [#allocation6 + $0x1], 1 }

</bundles_post_ra>
